<compile_context>
chip_gen: v7x
topology: tpu7x:2x2x1
jax: 0.10.0
libtpu: 0.0.40
codegen_flags: <defaults>
</compile_context>

<pallas_src>
import jax
import jax.numpy as jnp
import numpy as np
from jax.experimental import pallas as pl
from jax.experimental.pallas import tpu as pltpu

VOCAB = 58416
EMB_SIZE = (4,)            # emb_size[0] must be 4 to match Linear(4, hidden_size[0])
HIDDEN_SIZE = (32, 16)
NUM_CLASSES = 8

MAX_TB = 32768             # 32K lanes: f32 intermediates + double buffers ~= 11 MiB VMEM


def mlp_kernel(x_ref, w1_ref, b1_ref, w2_ref, b2_ref, w3_ref, b3_ref, o_ref):
    """Batch-in-lanes MLP.

    x_ref: (E, tb)  -- already the elementwise product p1*p2, transposed.
    w*:    (out, in) PyTorch layout;  b*: (out, 1) columns (broadcast over lanes).
    o_ref: (C, tb)  -- lane-dense store (tb is a multiple of 128, no masked vst).
    """
    x = x_ref[...]                                                        # (E, tb)
    h = jnp.dot(w1_ref[...], x, preferred_element_type=jnp.float32) + b1_ref[...]
    h = jnp.maximum(h, 0.0)                                               # (H0, tb)
    h = jnp.dot(w2_ref[...], h, preferred_element_type=jnp.float32) + b2_ref[...]
    h = jnp.maximum(h, 0.0)                                               # (H1, tb)
    out = jnp.dot(w3_ref[...], h, preferred_element_type=jnp.float32) + b3_ref[...]
    o_ref[...] = out.astype(o_ref.dtype)                                  # (C, tb)


def _auto_tb(B):
    """Pick a lane tile: as large as possible (<=32768) but >=2 grid steps once
    the batch is big enough, so v7x's two TensorCores both get work."""
    lanes = 128 * pl.cdiv(B, 128)
    if lanes <= 16384:
        return lanes                                   # tiny batch: one step, one DMA
    return min(MAX_TB, 128 * pl.cdiv(lanes // 2, 128)) # >=2 steps, tile capped at 32K


def mlp_forward_pallas(x_prod_T, w1, b1, w2, b2, w3, b3, *, tb=None):
    """x_prod_T: (E, B) = (p1*p2)^T, lane-dense.  Returns (C, B) batch-in-lanes."""
    E, B = x_prod_T.shape
    C = w3.shape[0]

    if tb is None:
        tb = _auto_tb(B)
    # Lane-dense tile: multiple of 128, no bigger than the (lane-padded) batch or MAX_TB.
    tb = max(128, min(int(tb), MAX_TB, 128 * pl.cdiv(B, 128)))
    tb = 128 * pl.cdiv(tb, 128)
    B_pad = tb * pl.cdiv(B, tb)
    if B_pad != B:
        x_prod_T = jnp.pad(x_prod_T, ((0, 0), (0, B_pad - B)))   # padded cols are zeros

    full = lambda a: pl.BlockSpec(a.shape, lambda i: (0, 0))     # resident weights/biases
    grid_spec = pltpu.PrefetchScalarGridSpec(
        num_scalar_prefetch=0,
        grid=(B_pad // tb,),
        in_specs=[
            pl.BlockSpec((E, tb), lambda i: (0, i)),             # streamed (4, tb) product
            full(w1), full(b1),
            full(w2), full(b2),
            full(w3), full(b3),
        ],
        out_specs=pl.BlockSpec((C, tb), lambda i: (0, i)),
    )

    out_T = pl.pallas_call(
        mlp_kernel,
        out_shape=jax.ShapeDtypeStruct((C, B_pad), jnp.float32),
        grid_spec=grid_spec,
        compiler_params=pltpu.CompilerParams(
            dimension_semantics=("parallel",),       # shards grid across TCs on v7x
            vmem_limit_bytes=32 * 1024 * 1024),      # headroom for tb up to 32768
    )(x_prod_T, w1, b1, w2, b2, w3, b3)

    return out_T[:, :B]                              # (C, B) batch-in-lanes


def init_params(key):
    """PyTorch-style layout: weights (out, in), biases stored as (out, 1) columns."""
    E, (H0, H1), C = EMB_SIZE[0], HIDDEN_SIZE, NUM_CLASSES
    ks = jax.random.split(key, 4)

    emb = jax.random.normal(ks[0], (VOCAB, E), dtype=jnp.float32)

    def linear(k, fan_in, fan_out):
        kw, kb = jax.random.split(k)
        bound = 1.0 / np.sqrt(fan_in)
        w = jax.random.uniform(kw, (fan_out, fan_in), jnp.float32, -bound, bound)
        b = jax.random.uniform(kb, (fan_out, 1), jnp.float32, -bound, bound)
        return w, b

    w1, b1 = linear(ks[1], E, H0)
    w2, b2 = linear(ks[2], H0, H1)
    w3, b3 = linear(ks[3], H1, C)
    return emb, (w1, b1, w2, b2, w3, b3)


def mlp_forward(x, emb_T, layers, *, tb=None, batch_in_lanes=False):
    """x: (B, 2) float ids (the PyTorch module casts with .long()).
    emb_T: (E, VOCAB) pre-transposed, lane-dense embedding table (one-time conversion).
    Returns (B, C) by default; (C, B) lane-dense slab if batch_in_lanes=True."""
    w1, b1, w2, b2, w3, b3 = layers
    ids = x.astype(jnp.int32)                        # exact: VOCAB < 2^24
    # Column gathers from the (E, VOCAB) table produce (E, B) directly -> no
    # (B,2,E) materialization + transpose round trip through HBM.
    p1T = jnp.take(emb_T, ids[:, 0], axis=1)         # (E, B)
    p2T = jnp.take(emb_T, ids[:, 1], axis=1)         # (E, B)
    x_prod_T = p1T * p2T                             # product fused into gather epilogue
    out_T = mlp_forward_pallas(x_prod_T, w1, b1, w2, b2, w3, b3, tb=tb)
    if batch_in_lanes:
        return out_T                                 # (C, B): keep lane-dense for consumers
    return out_T.T                                   # (B, C): PyTorch module layout


def mlp_forward_ref(x, emb, layers):
    w1, b1, w2, b2, w3, b3 = layers
    idx = x.astype(jnp.int32)
    p1 = emb[idx[:, 0]]
    p2 = emb[idx[:, 1]]
    h = p1 * p2
    h = jnp.maximum(h @ w1.T + b1[:, 0], 0.0)
    h = jnp.maximum(h @ w2.T + b2[:, 0], 0.0)
    return h @ w3.T + b3[:, 0]


if __name__ == "__main__":
    key = jax.random.PRNGKey(0)
    k_param, k1, k2, k3 = jax.random.split(key, 4)

    emb, layers = init_params(k_param)
    emb_T = jnp.asarray(emb.T)                       # one-time (E, VOCAB) lane-dense table

    # Test 1: tiny batch (single 128-wide tile, padded internally).
    B1 = 8
    x1 = jax.random.randint(k1, (B1, 2), 0, VOCAB, dtype=jnp.int32).astype(jnp.float32)
    out1 = jax.block_until_ready(mlp_forward(x1, emb_T, layers))
    ref1 = mlp_forward_ref(x1, emb, layers)
    np.testing.assert_allclose(np.asarray(out1), np.asarray(ref1), rtol=1e-5, atol=1e-5)

    # Test 2: ragged batch with an explicit small tile -> multi-step grid
    # (exercises padding + software pipelining across grid steps).
    B2 = 300
    x2 = jax.random.randint(k2, (B2, 2), 0, VOCAB, dtype=jnp.int32).astype(jnp.float32)
    out2 = jax.block_until_ready(mlp_forward(x2, emb_T, layers, tb=128))
    ref2 = mlp_forward_ref(x2, emb, layers)
    np.testing.assert_allclose(np.asarray(out2), np.asarray(ref2), rtol=1e-5, atol=1e-5)

    # Test 3: batch large enough that the auto-tile picks >=2 grid steps
    # (the v7x two-TensorCore path) while staying a small problem overall.
    B3 = 20000
    x3 = jax.random.randint(k3, (B3, 2), 0, VOCAB, dtype=jnp.int32).astype(jnp.float32)
    out3 = jax.block_until_ready(mlp_forward(x3, emb_T, layers))
    ref3 = mlp_forward_ref(x3, emb, layers)
    np.testing.assert_allclose(np.asarray(out3), np.asarray(ref3), rtol=1e-5, atol=1e-5)

    # Same batch through the transpose-free batch-in-lanes output path.
    out3_lanes = jax.block_until_ready(mlp_forward(x3, emb_T, layers, batch_in_lanes=True))
    np.testing.assert_allclose(np.asarray(out3_lanes.T), np.asarray(ref3),
                               rtol=1e-5, atol=1e-5)

    print("KERNEL_OK")
</pallas_src>

<mosaic_0001>
module attributes {stable_mosaic.version = 11 : i64} {
  func.func @mlp_kernel(%arg0: i32, %arg1: memref<4x128xf32, #tpu.memory_space<vmem>>, %arg2: memref<32x4xf32, #tpu.memory_space<vmem>>, %arg3: memref<32x1xf32, #tpu.memory_space<vmem>>, %arg4: memref<16x32xf32, #tpu.memory_space<vmem>>, %arg5: memref<16x1xf32, #tpu.memory_space<vmem>>, %arg6: memref<8x16xf32, #tpu.memory_space<vmem>>, %arg7: memref<8x1xf32, #tpu.memory_space<vmem>>, %arg8: memref<8x128xf32, #tpu.memory_space<vmem>>) attributes {dimension_semantics = [#tpu.dimension_semantics<parallel>], iteration_bounds = array<i64: 1>, scalar_prefetch = 0 : i64, scratch_operands = 0 : i64, tpu.core_type = #tpu.core_type<tc>, window_params = [{transform_indices = @transform_0, window_bounds = array<i64: 4, 128>}, {pipeline_mode = #tpu.pipeline_mode<synchronous>, transform_indices = @transform_1, window_bounds = array<i64: 32, 4>}, {pipeline_mode = #tpu.pipeline_mode<synchronous>, transform_indices = @transform_2, window_bounds = array<i64: 32, 1>}, {pipeline_mode = #tpu.pipeline_mode<synchronous>, transform_indices = @transform_3, window_bounds = array<i64: 16, 32>}, {pipeline_mode = #tpu.pipeline_mode<synchronous>, transform_indices = @transform_4, window_bounds = array<i64: 16, 1>}, {pipeline_mode = #tpu.pipeline_mode<synchronous>, transform_indices = @transform_5, window_bounds = array<i64: 8, 16>}, {pipeline_mode = #tpu.pipeline_mode<synchronous>, transform_indices = @transform_6, window_bounds = array<i64: 8, 1>}, {transform_indices = @transform_7, window_bounds = array<i64: 8, 128>}]} {
    %c0 = arith.constant 0 : index
    %c0_0 = arith.constant 0 : index
    %0 = vector.load %arg1[%c0, %c0_0] : memref<4x128xf32, #tpu.memory_space<vmem>>, vector<4x128xf32>
    %c0_1 = arith.constant 0 : index
    %c0_2 = arith.constant 0 : index
    %1 = vector.load %arg2[%c0_1, %c0_2] : memref<32x4xf32, #tpu.memory_space<vmem>>, vector<32x4xf32>
    %cst = arith.constant dense<0.000000e+00> : vector<32x128xf32>
    %2 = tpu.matmul %1, %0, %cst {dimension_numbers = #tpu.dot_dimension_numbers<[1], [0], [0], [1], [0, 0, 1, 1], [], []>} : vector<32x4xf32>, vector<4x128xf32>, vector<32x128xf32> -> vector<32x128xf32>
    %c0_3 = arith.constant 0 : index
    %c0_4 = arith.constant 0 : index
    %3 = vector.load %arg3[%c0_3, %c0_4] : memref<32x1xf32, #tpu.memory_space<vmem>>, vector<32x1xf32>
    %4 = vector.broadcast %3 : vector<32x1xf32> to vector<32x128xf32>
    %5 = arith.addf %2, %4 : vector<32x128xf32>
    %cst_5 = arith.constant 0.000000e+00 : f32
    %6 = vector.broadcast %cst_5 : f32 to vector<32x128xf32>
    %7 = arith.maximumf %5, %6 : vector<32x128xf32>
    %c0_6 = arith.constant 0 : index
    %c0_7 = arith.constant 0 : index
    %8 = vector.load %arg4[%c0_6, %c0_7] : memref<16x32xf32, #tpu.memory_space<vmem>>, vector<16x32xf32>
    %cst_8 = arith.constant dense<0.000000e+00> : vector<16x128xf32>
    %9 = tpu.matmul %8, %7, %cst_8 {dimension_numbers = #tpu.dot_dimension_numbers<[1], [0], [0], [1], [0, 0, 1, 1], [], []>} : vector<16x32xf32>, vector<32x128xf32>, vector<16x128xf32> -> vector<16x128xf32>
    %c0_9 = arith.constant 0 : index
    %c0_10 = arith.constant 0 : index
    %10 = vector.load %arg5[%c0_9, %c0_10] : memref<16x1xf32, #tpu.memory_space<vmem>>, vector<16x1xf32>
    %11 = vector.broadcast %10 : vector<16x1xf32> to vector<16x128xf32>
    %12 = arith.addf %9, %11 : vector<16x128xf32>
    %cst_11 = arith.constant 0.000000e+00 : f32
    %13 = vector.broadcast %cst_11 : f32 to vector<16x128xf32>
    %14 = arith.maximumf %12, %13 : vector<16x128xf32>
    %c0_12 = arith.constant 0 : index
    %c0_13 = arith.constant 0 : index
    %15 = vector.load %arg6[%c0_12, %c0_13] : memref<8x16xf32, #tpu.memory_space<vmem>>, vector<8x16xf32>
    %cst_14 = arith.constant dense<0.000000e+00> : vector<8x128xf32>
    %16 = tpu.matmul %15, %14, %cst_14 {dimension_numbers = #tpu.dot_dimension_numbers<[1], [0], [0], [1], [0, 0, 1, 1], [], []>} : vector<8x16xf32>, vector<16x128xf32>, vector<8x128xf32> -> vector<8x128xf32>
    %c0_15 = arith.constant 0 : index
    %c0_16 = arith.constant 0 : index
    %17 = vector.load %arg7[%c0_15, %c0_16] : memref<8x1xf32, #tpu.memory_space<vmem>>, vector<8x1xf32>
    %18 = vector.broadcast %17 : vector<8x1xf32> to vector<8x128xf32>
    %19 = arith.addf %16, %18 : vector<8x128xf32>
    %c0_17 = arith.constant 0 : index
    %c0_18 = arith.constant 0 : index
    %20 = vector.load %arg8[%c0_17, %c0_18] : memref<8x128xf32, #tpu.memory_space<vmem>>, vector<8x128xf32>
    tpu.vector_store %arg8[%c0_17, %c0_18], %19 {strides = array<i32>} : memref<8x128xf32, #tpu.memory_space<vmem>>, vector<8x128xf32>,
    return
  }
  func.func @transform_0(%arg0: i32) -> (i32, i32) {
    %c0_i32 = arith.constant 0 : i32
    %c0_i32_0 = arith.constant 0 : i32
    return %c0_i32, %arg0 : i32, i32
  }
  func.func @transform_1(%arg0: i32) -> (i32, i32) {
    %c0_i32 = arith.constant 0 : i32
    %c0_i32_0 = arith.constant 0 : i32
    %c0_i32_1 = arith.constant 0 : i32
    return %c0_i32, %c0_i32_0 : i32, i32
  }
  func.func @transform_2(%arg0: i32) -> (i32, i32) {
    %c0_i32 = arith.constant 0 : i32
    %c0_i32_0 = arith.constant 0 : i32
    %c0_i32_1 = arith.constant 0 : i32
    return %c0_i32, %c0_i32_0 : i32, i32
  }
  func.func @transform_3(%arg0: i32) -> (i32, i32) {
    %c0_i32 = arith.constant 0 : i32
    %c0_i32_0 = arith.constant 0 : i32
    %c0_i32_1 = arith.constant 0 : i32
    return %c0_i32, %c0_i32_0 : i32, i32
  }
  func.func @transform_4(%arg0: i32) -> (i32, i32) {
    %c0_i32 = arith.constant 0 : i32
    %c0_i32_0 = arith.constant 0 : i32
    %c0_i32_1 = arith.constant 0 : i32
    return %c0_i32, %c0_i32_0 : i32, i32
  }
  func.func @transform_5(%arg0: i32) -> (i32, i32) {
    %c0_i32 = arith.constant 0 : i32
    %c0_i32_0 = arith.constant 0 : i32
    %c0_i32_1 = arith.constant 0 : i32
    return %c0_i32, %c0_i32_0 : i32, i32
  }
  func.func @transform_6(%arg0: i32) -> (i32, i32) {
    %c0_i32 = arith.constant 0 : i32
    %c0_i32_0 = arith.constant 0 : i32
    %c0_i32_1 = arith.constant 0 : i32
    return %c0_i32, %c0_i32_0 : i32, i32
  }
  func.func @transform_7(%arg0: i32) -> (i32, i32) {
    %c0_i32 = arith.constant 0 : i32
    %c0_i32_0 = arith.constant 0 : i32
    return %c0_i32, %arg0 : i32, i32
  }
}

</mosaic_0001>

<bundles_post_ra>
// kernel: tpu_custom_call.1
= control target key start
LH: loop header
LB: loop body
LE: loop exit
PB: predicated region body
PF: predicated region fallthrough
CT: control target
= control target key end

     0   :  { %vm69_vm0 = vcmask 1043456   ;;  %vm56_vm1 = vcmask 31744   ;;  %v446_v5 = vmov 0   ;;  %s554_s0 = inlined_call_operand.vmem [shape: f32[4,128], index: 0, kind: input, shape index: {}]   ;;  %s555_s1 = inlined_call_operand.vmem [shape: f32[32,4], index: 1, kind: input, shape index: {}]   ;;  %s556_s2 = inlined_call_operand.vmem [shape: f32[32,1], index: 2, kind: input, shape index: {}]   ;;  %s557_s3 = inlined_call_operand.vmem [shape: f32[16,32], index: 3, kind: input, shape index: {}]   ;;  %s558_s4 = inlined_call_operand.vmem [shape: f32[16,1], index: 4, kind: input, shape index: {}]   ;;  %s559_s5 = inlined_call_operand.vmem [shape: f32[8,16], index: 5, kind: input, shape index: {}]   ;;  %s560_s6 = inlined_call_operand.vmem [shape: f32[8,1], index: 6, kind: input, shape index: {}]   ;;  %s561_s7 = inlined_call_operand.hbm [shape: f32[8,128], index: 7, kind: output, shape index: {}]  }
   0x1   :  { %v27_v0 = vld [vmem:[%s554_s0] sm:$0xf]  ;;  %v29_v2 = vld [vmem:[%s555_s1 + $0x8] sm:$0xff]  ;;  %v30_v3 = vld [vmem:[%s555_s1 + $0x10] sm:$0xff]  ;;  %420 = vset.pattern.permute.xlu0 %v446_v5  ;;  %421 = vset.pattern.permute.xlu1 %v446_v5 }
   0x2   :  { %v28_v1 = vld [vmem:[%s555_s1] sm:$0xff]  ;;  %378 = vmatprep.subr.msk.mxu0 %vm69_vm0, %v27_v0  ;;  %v34_v6 = vld [vmem:[%s556_s2 + $0x10] sm:$0xff]  ;;  %v31_v7 = vld [vmem:[%s555_s1 + $0x18] sm:$0xff] }
   0x3   :  { %380 = vmatprep.mubr.msk.f32.mxu0 %vm56_vm1, %v28_v1  ;;  %v32_v4 = vld [vmem:[%s556_s2] sm:$0xff]  ;;  %379 = vmatpush3.msk.msra.mxu0 %vm69_vm0, %v27_v0  ;;  %v33_v8 = vld [vmem:[%s556_s2 + $0x8] sm:$0xff] }
   0x4   :  { %381 = vmatmul.mubr.msk.f32.vlgmr.msra.gmra.mrb[0].mxu0 %vm56_vm1, %v29_v2  ;;  %38 = vperm.xlu0 %420, %v32_v4  }
   0x5   :  { %383 = vmatprep.mubr.msk.f32.mxu0 %vm56_vm1, %v30_v3 }
   0x6   :  { %12 = vsyncpa [#allocation3], 0  ;;  %48 = vperm.xlu1 %421, %v34_v6   ;;  %v35_v9 = vld [vmem:[%s556_s2 + $0x18] sm:$0xff]  ;;  %v164_v10 = vld [vmem:[%s558_s4] sm:$0xff]  ;;  %vm176_vm2 = vcmask 261120   ;;  %v447_v33 = vmov 0.0|0.0  }
   0x7   :  { %v165_v11 = vld [vmem:[%s558_s4 + $0x8] sm:$0xff]  ;;  %v261_v12 = vld [vmem:[%s560_s6] sm:$0xff]  ;;  %412 = vmatprep.subr.bf16.mxu0 %v447_v33  ;;  %vm448_vm3 = vmmov 0   ;;  %v449_v34 = vmov 0.0   ;;  %vm267_vm4 = vcmask 130048  }
   0x8   :  { %384 = vmatmul.mubr.msk.f32.gmra.mrb[2].mxu0 %vm56_vm1, %v31_v7  ;;  %43 = vperm.xlu0 %420, %v33_v8   ;;  %v162_v13 = vld [vmem:[%s557_s3] sm:$0xff]  ;;  %v163_v32 = vld [vmem:[%s557_s3 + $0x8] sm:$0xff]  ;;  %s450_s3 = smov [#allocation2]  }
   0x9   :  { %394 = vmatprep.mubr.msk.f32.mxu1 %vm176_vm2, %v162_v13  ;;  %401 = vmatprep.mubr.msk.f32.mxu0 %vm448_vm3, %v449_v34  ;;  %v260_v44 = vld [vmem:[%s559_s5] sm:$0xff]  ;;  %s348_s26 = sshll.u32 %s450_s3, 4  ;;  %s349_s26 = int_to_ptr.vmem [resolvable:$true] %s348_s26 }
   0xa   :  { %53 = vperm.xlu1 %421, %v35_v9   ;;  %s422_s27 = scalar_lea.vmem %s349_s26, 128  ;;  %p427_p1 = scmp.lt.s32.totalorder %s349_s26, %s349_s26 }
   0xb   :  { %p423_p0 = scmp.ne.s32.totalorder %s349_s26, %s422_s27  ;;  %p428_p2 = scmp.lt.s32.totalorder %s422_s27, %s422_s27 }
   0xc   :  { %168 = vperm.xlu0 %420, %v164_v10  }
   0xd   :  { %p429_p3 = por %p428_p2, %p427_p1 }
   0xe   :  { %173 = vperm.xlu1 %421, %v165_v11  }
   0xf   :  { %p430_p4 = pnand %p429_p3, %p423_p0 }
  0x10   :  { %264 = vperm.xlu0 %420, %v261_v12  }
  0x83   :  { %v39_v14 = vpop.permute.xlu0 %38 }
  0x85   :  { %v49_v15 = vpop.permute.xlu1 %48 }
  0x87   :  { %v44_v16 = vpop.permute.xlu0 %43 }
  0x89   :  { %v54_v22 = vpop.permute.xlu1 %53 }
  0x8b   :  { %v169_v37 = vpop.permute.xlu0 %168 }
  0x8d   :  { %v174_v35 = vpop.permute.xlu1 %173 }
  0x8f   :  { %v265_v45 = vpop.permute.xlu0 %264 }
  0xd7   :  { %v382_v17 = vpop.f32.mrb[0].mxu0 }
  0xd8   :  { %v145_v18 = vadd.f32 %v382_v17, %v44_v16  ;;  %v139_v19 = vpop.f32.mrb[1].mxu0 }
  0xd9   :  { %v140_v20 = vadd.f32 %v139_v19, %v39_v14 }
  0xda   :  { %v159_v21 = vmax.f32 %v145_v18, 0.0 }
  0xdb   :  { %v158_v23 = vmax.f32 %v140_v20, 0.0  ;;  %v385_v24 = vpop.f32.mrb[2].mxu0 }
  0xdc   :  { %v155_v25 = vadd.f32 %v385_v24, %v54_v22  ;;  %v149_v26 = vpop.f32.mrb[3].mxu0 }
  0xdd   :  { %v150_v27 = vadd.f32 %v149_v26, %v49_v15  ;;  %v404_v28 = vpack.c.bf16 %v159_v21, %v158_v23 }
  0xde   :  { %v161_v29 = vmax.f32 %v155_v25, 0.0 }
  0xdf   :  { %v160_v30 = vmax.f32 %v150_v27, 0.0  ;;  %405 = vmatprep.subr.bf16.mxu1 %v404_v28 }
  0xe0   :  { %407 = vmatpush3.bf16.msra.mxu1 %v404_v28 }
  0xe1   :  { %v408_v31 = vpack.c.bf16 %v161_v29, %v160_v30 }
  0xe3   :  { %409 = vmatprep.subr.bf16.mxu1 %v408_v31 }
  0xe4   :  { %411 = vmatpush3.bf16.msra.mxu1 %v408_v31 }
  0xe7   :  { %395 = vmatmul.mubr.msk.f32.vlgmr.msra.gmra.mrb[0].mxu1 %vm176_vm2, %v163_v32 }
 0x1ba   :  { %v396_v36 = vpop.f32.mrb[0].mxu1 }
 0x1bb   :  { %v255_v38 = vadd.f32 %v396_v36, %v174_v35  ;;  %v249_v39 = vpop.f32.mrb[1].mxu1 }
 0x1bc   :  { %v250_v40 = vadd.f32 %v249_v39, %v169_v37 }
 0x1bd   :  { %v259_v41 = vmax.f32 %v255_v38, 0.0 }
 0x1be   :  { %v258_v42 = vmax.f32 %v250_v40, 0.0 }
 0x1c0   :  { %v413_v43 = vpack.c.bf16 %v259_v41, %v258_v42 }
 0x1c2   :  { %414 = vmatpush3.bf16.msra.mxu0 %v413_v43 }
 0x1c5   :  { %402 = vmatmul.mubr.msk.f32.vlgmr.msra.gmra.mrb[4].mxu0 %vm267_vm4, %v260_v44 }
 0x298   :  { %v337_v46 = vpop.f32.mrb[4].mxu0 }
 0x299   :  { %v338_v47 = vadd.f32 %v337_v46, %v265_v45  ;;  %v403_v48 = vpop.f32.mrb[5].mxu0 }
 0x29b   :  { %341 = vst [vmem:[#allocation2] sm:$0xff] %v338_v47 }
 0x29c   :  { %433 = shalt.err (!%p430_p4)
}
 0x29d   :  { %s434_s5 = scalar_lea.hbm %s561_s7, 128 }
 0x29e   :  { %p435_p5 = scmp.ne.s32.totalorder %s561_s7, %s434_s5  ;;  %p438_p6 = scmp.lt.u32.totalorder %s434_s5, %s561_s7 }
 0x2a0   :  { %p440_p7 = pnand %p438_p6, %p435_p5 }
 0x2a2   :  { %443 = shalt.err (!%p440_p7)
}
 0x2a3   :  { %351 = dma.vmem_to_hbm [thread:$0]  %s349_s26, 128, %s561_s7, [#allocation3]  }
 0x2a4   :  { %444 = dma.done.wait [#allocation3], 128  }
 0x2a5   :  { %445 = vsyncadd [#allocation3], 4294967168 }
 0x2a6   :  { %355 = vsyncpa [#allocation3], 1 }

</bundles_post_ra>
